<compile_context>
chip_gen: v7x
topology: tpu7x:2x2x1
jax: 0.10.0
libtpu: 0.0.40
codegen_flags: <defaults>
</compile_context>

<pallas_src>
import math

import jax
import jax.numpy as jnp
from jax.experimental import pallas as pl
from jax.experimental.pallas import tpu as pltpu


_MIN_STEP_X_BYTES = 1 << 20      # aim for >= ~1 MiB of x per grid step (mem-bound)


def _spatial_block_kernel(xt_ref, wt_ref, b_ref, o_ref):
    """One lane-tile of the transposed, residual-fused GEMM.

    xt_ref: (c_in*N, TM)       columns = (batch, time) slabs (lane axis)
    wt_ref: (c_out*N, c_in*N)  folded theta/Lk weight (bf16, grid-invariant)
    b_ref : (c_out*N, 1)       per-(channel, node) bias (f32, grid-invariant)
    o_ref : (c_out*N, TM)      lane-dense output tile (unmasked stores for TM>=128)
    """
    acc = jnp.dot(wt_ref[...], xt_ref[...].astype(jnp.bfloat16),
                  preferred_element_type=jnp.float32)          # single MXU GEMM
    # Bias + residual + ReLU in f32; x is re-read for the residual (cheap vld,
    # the load slot has slack) instead of holding an f32 copy live across the dot.
    o_ref[...] = jnp.maximum(
        acc + b_ref[...] + xt_ref[...].astype(jnp.float32), 0.0
    ).astype(o_ref.dtype)


def _vmem_capacity_bytes():
    """Physical VMEM per TensorCore; conservative default = v7x's 64 MiB."""
    cap = 64 * 1024 * 1024
    try:
        info = pltpu.get_tpu_info()
        cap = int(getattr(info, "vmem_capacity_bytes", cap))
    except Exception:
        pass
    return cap


def _num_tensorcores():
    """TensorCores the 'parallel' grid axis can be sharded over (v7x: 2)."""
    try:
        kind = jax.devices()[0].device_kind.lower()
    except Exception:
        return 1
    return 2 if ("v7" in kind or "7x" in kind) else 1


def _pick_lane_tile(m, k, n_out, itemsize, tile_budget, resident_bytes, n_cores):
    """Lanes (B*T columns) per grid step.

    Sized so each step moves as much data as the VMEM budget allows (the kernel
    is HBM-bandwidth bound), kept 128-lane aligned for unmasked stores, and on
    multi-TC chips split so each core gets >= 4 steps when M is large enough.
    """
    per_col = 2 * (k + n_out) * itemsize            # double-buffered x + out columns
    budget = max(tile_budget - resident_bytes, 128 * per_col)
    tm = max(128, (budget // per_col) // 128 * 128)

    if m <= tm:
        # Whole problem fits one step's budget.  Split only when a multi-TC chip
        # gets >= 4 decent steps per core; splitting on a 1-TC chip is pure
        # per-step overhead at a memory-bound operating point.
        if n_cores > 1 and m >= n_cores * 4 * 128:
            steps = n_cores * 4
            return max(128, pl.cdiv(pl.cdiv(m, steps), 128) * 128)
        return m                                    # lane dim == full M is legal

    # Multiple steps anyway; on multi-TC chips make sure there are enough steps
    # to shard across cores while keeping >= ~1 MiB of x per step.
    if n_cores > 1:
        min_steps = 4 * n_cores
        if pl.cdiv(m, tm) < min_steps:
            cand = max(128, pl.cdiv(pl.cdiv(m, min_steps), 128) * 128)
            if cand * k * itemsize >= _MIN_STEP_X_BYTES:
                tm = cand
    return tm


def spatial_block(x, Lk, theta, b):
    """x: (B, c_in, T, N); Lk: (ks, N, N) or (N, N); theta: (c_in, c_out, ks);
    b: (1, c_out, 1, 1). Returns (B, c_out, T, N)."""
    if Lk.ndim == 2:
        Lk = Lk[None]
    B, c_in, T, N = x.shape
    ks = Lk.shape[0]
    c_out = theta.shape[1]
    if theta.shape != (c_in, c_out, ks):
        raise ValueError(f"theta shape {theta.shape} != {(c_in, c_out, ks)}")
    if c_out != c_in:
        raise ValueError(
            "SpatialBlock's residual add (x_gc + x) requires c_out == c_in; "
            f"got c_in={c_in}, c_out={c_out}")

    M, K, Nout = B * T, c_in * N, c_out * N
    itemsize = x.dtype.itemsize

    # Generation-aware VMEM budget (v5e/v6e: 128 MiB -> ~100 MiB scoped;
    # v7x: 64 MiB -> ~48 MiB scoped), with 20% headroom for compiler scratch.
    vmem_cap = _vmem_capacity_bytes()
    vmem_limit = int(min(max(vmem_cap - (16 << 20), 32 << 20), 100 << 20))
    tile_budget = int(vmem_limit * 0.8)

    w_bytes = K * Nout * 2          # bf16 folded weight
    bias_bytes = Nout * 4
    resident_bytes = 2 * (w_bytes + bias_bytes)   # default double-buffered residents
    if resident_bytes > tile_budget // 2:
        # TODO(synk): two-stage (unfolded Lk/theta, node-tiled) kernel for graphs
        # whose folded weight does not fit the per-generation VMEM budget.
        raise NotImplementedError(
            f"folded weight ({w_bytes/2**20:.1f} MiB) too large for this kernel "
            f"variant on a chip with {vmem_cap/2**20:.0f} MiB VMEM")

    # Fold the ks graph kernels and the channel mix into one transposed weight,
    # built once in XLA (tiny at these sizes):
    #   Wt[(o,n),(i,m)] = sum_k theta[i,o,k] * Lk[k,n,m]
    wt = jnp.einsum('iok,knm->onim', theta.astype(jnp.float32),
                    Lk.astype(jnp.float32)).reshape(Nout, K).astype(jnp.bfloat16)
    bias = jnp.broadcast_to(b.reshape(c_out, 1, 1), (c_out, N, 1))
    bias = bias.reshape(Nout, 1).astype(jnp.float32)

    # Transposed layout: rows = (channel, node), lanes = (batch, time).  One
    # layout pass in XLA; the residual x[b,i,t,m] is then exactly the matching
    # row/column of the input block fed to the MXU.
    xt = jnp.transpose(x, (1, 3, 0, 2)).reshape(K, M)

    tm = _pick_lane_tile(M, K, Nout, itemsize, tile_budget, resident_bytes,
                         _num_tensorcores())
    grid = (pl.cdiv(M, tm),)

    grid_spec = pltpu.PrefetchScalarGridSpec(
        num_scalar_prefetch=0,
        grid=grid,
        in_specs=[
            pl.BlockSpec((K, tm), lambda i: (0, i)),
            pl.BlockSpec((Nout, K), lambda i: (0, 0)),   # grid-invariant: no re-DMA
            pl.BlockSpec((Nout, 1), lambda i: (0, 0)),   # grid-invariant: no re-DMA
        ],
        out_specs=pl.BlockSpec((Nout, tm), lambda i: (0, i)),
    )

    out_t = pl.pallas_call(
        _spatial_block_kernel,
        out_shape=jax.ShapeDtypeStruct((Nout, M), x.dtype),
        grid_spec=grid_spec,
        compiler_params=pltpu.CompilerParams(
            dimension_semantics=("parallel",),
            vmem_limit_bytes=vmem_limit),
    )(xt, wt, bias)

    # (c_out*N, B*T) -> (B, c_out, T, N)
    return jnp.transpose(out_t.reshape(c_out, N, B, T), (2, 0, 3, 1))


def init_params(key, ks, c_in, c_out):
    """Deterministic init matching the PyTorch reset_parameters() distributions."""
    k_theta, k_b = jax.random.split(key)
    # kaiming_uniform_(theta, a=sqrt(5)) on tensor (c_in, c_out, ks):
    #   fan_in = size(1) * prod(size(2:)) = c_out * ks ; bound = 1/sqrt(fan_in)
    fan_in = c_out * ks
    bound = 1.0 / math.sqrt(fan_in)
    theta = jax.random.uniform(k_theta, (c_in, c_out, ks), jnp.float32, -bound, bound)
    b = jax.random.uniform(k_b, (1, c_out, 1, 1), jnp.float32, -bound, bound)
    return theta, b


def reference(x, Lk, theta, b):
    if Lk.ndim == 2:
        Lk = Lk[None]
    x_c = jnp.einsum('knm,bitm->bitkn', Lk, x)
    x_gc = jnp.einsum('iok,bitkn->botn', theta, x_c) + b
    return jax.nn.relu(x_gc + x)


if __name__ == "__main__":
    B, C_IN, C_OUT, T, N, KS = 2, 4, 4, 8, 16, 3   # residual add needs c_out == c_in

    key = jax.random.PRNGKey(0)
    kx, klk, kp = jax.random.split(key, 3)
    x = jax.random.normal(kx, (B, C_IN, T, N), jnp.float32)
    Lk = jax.random.normal(klk, (KS, N, N), jnp.float32) / math.sqrt(N)
    theta, b = init_params(kp, KS, C_IN, C_OUT)

    out = jax.block_until_ready(spatial_block(x, Lk, theta, b))

    ref = reference(x, Lk, theta, b)
    assert out.shape == (B, C_OUT, T, N)
    err = jnp.max(jnp.abs(out - ref))
    # bf16 MXU inputs (f32 accumulate / elementwise) -> relaxed tolerance vs f32 ref.
    assert jnp.allclose(out, ref, atol=3e-2, rtol=3e-2), f"max err {err}"
    print("KERNEL_OK")
</pallas_src>

<mosaic_0001>
module attributes {stable_mosaic.version = 11 : i64} {
  func.func @_spatial_block_kernel(%arg0: i32, %arg1: memref<64x16xf32, #tpu.memory_space<vmem>>, %arg2: memref<64x64xbf16, #tpu.memory_space<vmem>>, %arg3: memref<64x1xf32, #tpu.memory_space<vmem>>, %arg4: memref<64x16xf32, #tpu.memory_space<vmem>>) attributes {dimension_semantics = [#tpu.dimension_semantics<parallel>], iteration_bounds = array<i64: 1>, scalar_prefetch = 0 : i64, scratch_operands = 0 : i64, tpu.core_type = #tpu.core_type<tc>, window_params = [{transform_indices = @transform_0, window_bounds = array<i64: 64, 16>}, {pipeline_mode = #tpu.pipeline_mode<synchronous>, transform_indices = @transform_1, window_bounds = array<i64: 64, 64>}, {pipeline_mode = #tpu.pipeline_mode<synchronous>, transform_indices = @transform_2, window_bounds = array<i64: 64, 1>}, {transform_indices = @transform_3, window_bounds = array<i64: 64, 16>}]} {
    %c0 = arith.constant 0 : index
    %c0_0 = arith.constant 0 : index
    %0 = vector.load %arg2[%c0, %c0_0] : memref<64x64xbf16, #tpu.memory_space<vmem>>, vector<64x64xbf16>
    %c0_1 = arith.constant 0 : index
    %c0_2 = arith.constant 0 : index
    %1 = vector.load %arg1[%c0_1, %c0_2] : memref<64x16xf32, #tpu.memory_space<vmem>>, vector<64x16xf32>
    %2 = arith.truncf %1 : vector<64x16xf32> to vector<64x16xbf16>
    %cst = arith.constant dense<0.000000e+00> : vector<64x16xf32>
    %3 = tpu.matmul %0, %2, %cst {dimension_numbers = #tpu.dot_dimension_numbers<[1], [0], [0], [1], [0, 0, 1, 1], [], []>} : vector<64x64xbf16>, vector<64x16xbf16>, vector<64x16xf32> -> vector<64x16xf32>
    %c0_3 = arith.constant 0 : index
    %c0_4 = arith.constant 0 : index
    %4 = vector.load %arg3[%c0_3, %c0_4] : memref<64x1xf32, #tpu.memory_space<vmem>>, vector<64x1xf32>
    %5 = vector.broadcast %4 : vector<64x1xf32> to vector<64x16xf32>
    %6 = arith.addf %3, %5 : vector<64x16xf32>
    %c0_5 = arith.constant 0 : index
    %c0_6 = arith.constant 0 : index
    %7 = vector.load %arg1[%c0_5, %c0_6] : memref<64x16xf32, #tpu.memory_space<vmem>>, vector<64x16xf32>
    %8 = arith.addf %6, %7 : vector<64x16xf32>
    %cst_7 = arith.constant 0.000000e+00 : f32
    %9 = vector.broadcast %cst_7 : f32 to vector<64x16xf32>
    %10 = arith.maximumf %8, %9 : vector<64x16xf32>
    %c0_8 = arith.constant 0 : index
    %c0_9 = arith.constant 0 : index
    %11 = vector.load %arg4[%c0_8, %c0_9] : memref<64x16xf32, #tpu.memory_space<vmem>>, vector<64x16xf32>
    tpu.vector_store %arg4[%c0_8, %c0_9], %10 {strides = array<i32>} : memref<64x16xf32, #tpu.memory_space<vmem>>, vector<64x16xf32>,
    return
  }
  func.func @transform_0(%arg0: i32) -> (i32, i32) {
    %c0_i32 = arith.constant 0 : i32
    %c0_i32_0 = arith.constant 0 : i32
    return %c0_i32, %arg0 : i32, i32
  }
  func.func @transform_1(%arg0: i32) -> (i32, i32) {
    %c0_i32 = arith.constant 0 : i32
    %c0_i32_0 = arith.constant 0 : i32
    %c0_i32_1 = arith.constant 0 : i32
    return %c0_i32, %c0_i32_0 : i32, i32
  }
  func.func @transform_2(%arg0: i32) -> (i32, i32) {
    %c0_i32 = arith.constant 0 : i32
    %c0_i32_0 = arith.constant 0 : i32
    %c0_i32_1 = arith.constant 0 : i32
    return %c0_i32, %c0_i32_0 : i32, i32
  }
  func.func @transform_3(%arg0: i32) -> (i32, i32) {
    %c0_i32 = arith.constant 0 : i32
    %c0_i32_0 = arith.constant 0 : i32
    return %c0_i32, %arg0 : i32, i32
  }
}

</mosaic_0001>

<bundles_post_ra>
// kernel: tpu_custom_call.1
= control target key start
LH: loop header
LB: loop body
LE: loop exit
PB: predicated region body
PF: predicated region fallthrough
CT: control target
= control target key end

     0   :  { %v257_v3 = vmov 0   ;;  %vm103_vm0 = vcmask 523264   ;;  %vm197_vm1 = vcmask 130048   ;;  %s402_s0 = inlined_call_operand.vmem [shape: f32[64,16], index: 0, kind: input, shape index: {}]   ;;  %s403_s1 = inlined_call_operand.vmem [shape: bf16[64,64], index: 1, kind: input, shape index: {}]   ;;  %s404_s2 = inlined_call_operand.vmem [shape: f32[64,1], index: 2, kind: input, shape index: {}]   ;;  %s405_s3 = inlined_call_operand.vmem [shape: f32[64,16], index: 3, kind: output, shape index: {}]  }
   0x1   :  { %v281_v0 = vld [vmem:[%s402_s0] sm:$0xff]  ;;  %v286_v1 = vld [vmem:[%s402_s0 + $0x8] sm:$0xff]  ;;  %v291_v2 = vld [vmem:[%s402_s0 + $0x10] sm:$0xff]  ;;  %252 = vset.pattern.permute.xlu1 %v257_v3  ;;  %251 = vset.pattern.permute.xlu0 %v257_v3 }
   0x2   :  { %v31_v4 = vpack.c.bf16 %v286_v1, %v281_v0  ;;  %v298_v5 = vld [vmem:[%s402_s0 + $0x18] sm:$0xff]  ;;  %v305_v7 = vld [vmem:[%s402_s0 + $0x20] sm:$0xff]  ;;  %v310_v8 = vld [vmem:[%s402_s0 + $0x28] sm:$0xff] }
   0x3   :  { %v32_v6 = vpack.c.bf16 %v298_v5, %v291_v2  ;;  %v253_v9 = vld [vmem:[%s403_s1] sm:$0xff]   ;;  %v254_v10 = vld [vmem:[%s403_s1 + $0x10] sm:$0xff]   ;;  %v33_v11 = vpack.c.bf16 %v310_v8, %v305_v7  ;;  %v326_v13 = vld [vmem:[%s402_s0 + $0x38] sm:$0xff] }
   0x4   :  { %226 = vmatprep.subr.bf16.mxu0 %v31_v4  ;;  %242 = vmatprep.subr.bf16.mxu1 %v31_v4  ;;  %v29_v12 = vld [vmem:[%s402_s0 + $0x30] sm:$0xff]  ;;  %v35_v15 = vld [vmem:[%s404_s2] sm:$0xff]  ;;  %v38_v16 = vld [vmem:[%s404_s2 + $0x18] sm:$0xff] }
   0x5   :  { %227 = vmatpush3.bf16.msra.mxu0 %v31_v4  ;;  %246 = vmatpush3.bf16.msra.mxu1 %v31_v4  ;;  %v37_v14 = vld [vmem:[%s404_s2 + $0x10] sm:$0xff]  ;;  %v34_v17 = vpack.c.bf16 %v326_v13, %v29_v12  ;;  %v36_v18 = vld [vmem:[%s404_s2 + $0x8] sm:$0xff]  ;;  %v256_v21 = vld [vmem:[%s403_s1 + $0x18] sm:$0xff]  }
   0x6   :  { %228 = vmatprep.subr.bf16.mxu0 %v32_v6  ;;  %243 = vmatprep.subr.bf16.mxu1 %v32_v6  ;;  %v40_v19 = vld [vmem:[%s404_s2 + $0x28] sm:$0xff]  ;;  %v39_v22 = vld [vmem:[%s404_s2 + $0x20] sm:$0xff]  ;;  %v42_v23 = vld [vmem:[%s404_s2 + $0x38] sm:$0xff] }
   0x7   :  { %234 = vmatprep.mubr.msk.bf16.mxu0 %vm103_vm0, %v253_v9  ;;  %238 = vmatprep.mubr.msk.bf16.mxu1 %vm103_vm0, %v254_v10  ;;  %v255_v20 = vld [vmem:[%s403_s1 + $0x8] sm:$0xff]   ;;  %v41_v24 = vld [vmem:[%s404_s2 + $0x30] sm:$0xff] }
   0x8   :  { %55 = vperm.xlu1 %252, %v37_v14   ;;  %45 = vperm.xlu0 %251, %v35_v15  }
   0x9   :  { %229 = vmatpush3.bf16.msra.mxu0 %v32_v6  ;;  %247 = vmatpush3.bf16.msra.mxu1 %v32_v6 }
   0xa   :  { %230 = vmatprep.subr.bf16.mxu0 %v33_v11  ;;  %244 = vmatprep.subr.bf16.mxu1 %v33_v11 }
   0xc   :  { %60 = vperm.xlu1 %252, %v38_v16   ;;  %50 = vperm.xlu0 %251, %v36_v18  }
   0xd   :  { %231 = vmatpush3.bf16.msra.mxu0 %v33_v11  ;;  %248 = vmatpush3.bf16.msra.mxu1 %v33_v11 }
   0xe   :  { %232 = vmatprep.subr.bf16.mxu0 %v34_v17  ;;  %245 = vmatprep.subr.bf16.mxu1 %v34_v17 }
  0x10   :  { %70 = vperm.xlu1 %252, %v40_v19   ;;  %65 = vperm.xlu0 %251, %v39_v22  }
  0x11   :  { %233 = vmatpush3.bf16.msra.mxu0 %v34_v17  ;;  %249 = vmatpush3.bf16.msra.mxu1 %v34_v17 }
  0x14   :  { %235 = vmatmul.mubr.msk.bf16.vlgmr.msra.gmra.mrb[0].mxu0 %vm103_vm0, %v255_v20  ;;  %239 = vmatmul.mubr.msk.bf16.vlgmr.msra.gmra.mrb[0].mxu1 %vm103_vm0, %v256_v21 }
  0x15   :  { %80 = vperm.xlu1 %252, %v42_v23   ;;  %75 = vperm.xlu0 %251, %v41_v24  }
  0x87   :  { %v56_v25 = vpop.permute.xlu1 %55  ;;  %v46_v26 = vpop.permute.xlu0 %45 }
  0x8b   :  { %v61_v27 = vpop.permute.xlu1 %60  ;;  %v51_v28 = vpop.permute.xlu0 %50 }
  0x8f   :  { %v71_v29 = vpop.permute.xlu1 %70  ;;  %v66_v30 = vpop.permute.xlu0 %65 }
  0x94   :  { %v81_v31 = vpop.permute.xlu1 %80  ;;  %v76_v32 = vpop.permute.xlu0 %75 }
  0xe7   :  { %v236_v33 = vpop.f32.mrb[0].mxu0  ;;  %v240_v34 = vpop.f32.mrb[0].mxu1 }
  0xe8   :  { %v159_v35 = vadd.f32 %v236_v33, %v56_v25  ;;  %v175_v36 = vadd.f32 %v240_v34, %v76_v32  ;;  %v150_v37 = vpop.f32.mrb[1].mxu0  ;;  %v166_v38 = vpop.f32.mrb[1].mxu1 }
  0xe9   :  { %v151_v39 = vadd.f32 %v150_v37, %v46_v26  ;;  %v167_v40 = vadd.f32 %v166_v38, %v66_v30  ;;  %v237_v41 = vpop.f32.mrb[2].mxu0  ;;  %v241_v42 = vpop.f32.mrb[2].mxu1 }
  0xea   :  { %v183_v43 = vadd.f32 %v159_v35, %v291_v2  ;;  %v187_v44 = vadd.f32 %v175_v36, %v29_v12  ;;  %v162_v45 = vadd.f32 %v237_v41, %v61_v27  ;;  %v178_v46 = vadd.f32 %v241_v42, %v81_v31  ;;  %v153_v47 = vpop.f32.mrb[3].mxu0  ;;  %v169_v48 = vpop.f32.mrb[3].mxu1 }
  0xeb   :  { %v181_v49 = vadd.f32 %v151_v39, %v281_v0  ;;  %v185_v50 = vadd.f32 %v167_v40, %v305_v7  ;;  %v154_v51 = vadd.f32 %v153_v47, %v51_v28  ;;  %v170_v52 = vadd.f32 %v169_v48, %v71_v29 }
  0xec   :  { %v191_v53 = vmax.f32 %v183_v43, 0.0  ;;  %v195_v54 = vmax.f32 %v187_v44, 0.0  ;;  %v184_v55 = vadd.f32 %v162_v45, %v298_v5  ;;  %v188_v56 = vadd.f32 %v178_v46, %v326_v13 }
  0xed   :  { %v189_v57 = vmax.f32 %v181_v49, 0.0  ;;  %v193_v58 = vmax.f32 %v185_v50, 0.0  ;;  %v182_v59 = vadd.f32 %v154_v51, %v286_v1  ;;  %v186_v60 = vadd.f32 %v170_v52, %v310_v8 }
  0xee   :  { %200 = vst.msk [vmem:[%s405_s3 + $0x10] sm:$0xff] %vm197_vm1, %v191_v53  ;;  %204 = vst.msk [vmem:[%s405_s3 + $0x30] sm:$0xff] %vm197_vm1, %v195_v54  ;;  %v192_v61 = vmax.f32 %v184_v55, 0.0  ;;  %v196_v62 = vmax.f32 %v188_v56, 0.0 }
  0xef   :  { %198 = vst.msk [vmem:[%s405_s3] sm:$0xff] %vm197_vm1, %v189_v57  ;;  %202 = vst.msk [vmem:[%s405_s3 + $0x20] sm:$0xff] %vm197_vm1, %v193_v58  ;;  %v190_v63 = vmax.f32 %v182_v59, 0.0  ;;  %v194_v0 = vmax.f32 %v186_v60, 0.0 }
  0xf0   :  { %201 = vst.msk [vmem:[%s405_s3 + $0x18] sm:$0xff] %vm197_vm1, %v192_v61  ;;  %205 = vst.msk [vmem:[%s405_s3 + $0x38] sm:$0xff] %vm197_vm1, %v196_v62 }
  0xf1   :  { %199 = vst.msk [vmem:[%s405_s3 + $0x8] sm:$0xff] %vm197_vm1, %v190_v63  ;;  %203 = vst.msk [vmem:[%s405_s3 + $0x28] sm:$0xff] %vm197_vm1, %v194_v0 }

</bundles_post_ra>
